<compile_context>
chip_gen: v5e
topology: v5e:2x2
jax: 0.10.0
libtpu: 0.0.40
codegen_flags: <defaults>
</compile_context>

<pallas_src>
import functools

import jax
import jax.numpy as jnp
from jax.experimental import pallas as pl
from jax.experimental.pallas import tpu as pltpu


def _round_up(x, m):
    return ((x + m - 1) // m) * m


# --------------------------------------------------------------------------
# Pass 1: stats-only.  Per-row-tile conv matmul + per-channel sum / sum-sq.
# Outputs are per-tile partials (no resident accumulator -> "parallel" grid).
# --------------------------------------------------------------------------
def _conv_stats_kernel(patches_ref, w_ref, sum_ref, sumsq_ref):
    acc = jnp.dot(patches_ref[...], w_ref[...],
                  preferred_element_type=jnp.float32)          # (TM, Cp) f32
    s = jnp.sum(acc, axis=0, keepdims=True)                    # (1, Cp)
    ss = jnp.sum(acc * acc, axis=0, keepdims=True)             # (1, Cp)
    sum_ref[...] = s[None]                                     # (1, 1, Cp)
    sumsq_ref[...] = ss[None]                                  # (1, 1, Cp)


# --------------------------------------------------------------------------
# Pass 2: recompute the conv matmul fused with folded BN affine + LeakyReLU.
# Output last dim is the true Cout (lane-masked store, but 16x fewer HBM bytes
# than a 128-padded output when Cout is small).
# --------------------------------------------------------------------------
def _conv_bn_lrelu_kernel(patches_ref, w_ref, params_ref, o_ref, *,
                          cout, negative_slope):
    acc = jnp.dot(patches_ref[...], w_ref[...],
                  preferred_element_type=jnp.float32)          # (TM, Cp) f32
    p = params_ref[...]                                        # (2, Cp)
    scale = p[0:1, :]
    shift = p[1:2, :]
    y = acc * scale + shift
    y = jnp.where(y > 0, y, negative_slope * y)
    o_ref[...] = y[:, :cout].astype(o_ref.dtype)


# --------------------------------------------------------------------------
# im2col (XLA glue): (N, Cin, H, W) -> (N*OH*OW, Cin*KH*KW), columns ordered
# (Cin, KH, KW) to match PyTorch's (Cout, Cin, KH, KW) weight layout.
# --------------------------------------------------------------------------
def _im2col(x_nchw, ksize, stride, padding, dilation):
    N, C, H, W = x_nchw.shape
    KH = KW = ksize
    OH = (H + 2 * padding - dilation * (KH - 1) - 1) // stride + 1
    OW = (W + 2 * padding - dilation * (KW - 1) - 1) // stride + 1
    xp = jnp.pad(x_nchw, ((0, 0), (0, 0), (padding, padding), (padding, padding)))
    taps = []
    for kh in range(KH):
        for kw in range(KW):
            sl = xp[:, :,
                    kh * dilation: kh * dilation + stride * OH: stride,
                    kw * dilation: kw * dilation + stride * OW: stride]
            taps.append(sl)
    p = jnp.stack(taps, axis=0).reshape(KH, KW, N, C, OH, OW)
    p = p.transpose(2, 4, 5, 3, 0, 1).reshape(N * OH * OW, C * KH * KW)
    return p, OH, OW


def conv_bn_leakyrelu(x_nchw, weight, bias, gamma, beta, *,
                      ksize, padding=0, stride=1, dilation=1,
                      eps=1e-5, negative_slope=0.1,
                      tile_m=1024, compute_dtype=jnp.bfloat16,
                      vmem_limit_bytes=64 * 1024 * 1024):
    """x_nchw: (N, Cin, H, W). weight: (Cout, Cin, KH, KW). Returns NCHW f32.

    `bias` is accepted for API fidelity but unused: training-mode BatchNorm's
    mean subtraction cancels the conv bias exactly.
    """
    del bias
    N, Cin, H, W = x_nchw.shape
    Cout = weight.shape[0]

    patches, OH, OW = _im2col(x_nchw, ksize, stride, padding, dilation)  # (R, K) f32
    R, K = patches.shape

    # Lane-dense padding of the contraction / MXU channel dims; row tiling.
    K_pad = _round_up(K, 128)
    C_pad = _round_up(Cout, 128)
    TM = max(16, _round_up(min(tile_m, R), 16))
    R_pad = _round_up(R, TM)
    n_tiles = R_pad // TM

    # Single fused pad + cast.  Padded rows/cols contribute exactly 0 to the
    # matmul and therefore 0 to the batch statistics (which divide by R).
    patches_p = jnp.pad(patches.astype(compute_dtype),
                        ((0, R_pad - R), (0, K_pad - K)))
    w_mat = weight.reshape(Cout, -1).T.astype(compute_dtype)            # (K, Cout)
    w_p = jnp.pad(w_mat, ((0, K_pad - K), (0, C_pad - Cout)))           # (Kp, Cp)

    cparams = pltpu.CompilerParams(dimension_semantics=("parallel",),
                                   vmem_limit_bytes=vmem_limit_bytes)

    # ---------------- Pass 1: per-tile conv statistics (no conv writeback) ----
    # TODO(synk): add a K / Cout grid axis with a VMEM accumulator before scaling
    # to real layer sizes (the resident (K_pad, C_pad) weight block assumes it
    # fits comfortably in VMEM, which is true here but not for Cin=Cout=1024).
    sums_t, sumsqs_t = pl.pallas_call(
        _conv_stats_kernel,
        out_shape=(jax.ShapeDtypeStruct((n_tiles, 1, C_pad), jnp.float32),
                   jax.ShapeDtypeStruct((n_tiles, 1, C_pad), jnp.float32)),
        grid_spec=pltpu.PrefetchScalarGridSpec(
            num_scalar_prefetch=0,
            grid=(n_tiles,),
            in_specs=[
                pl.BlockSpec((TM, K_pad), lambda i: (i, 0)),
                pl.BlockSpec((K_pad, C_pad), lambda i: (0, 0)),
            ],
            out_specs=(
                pl.BlockSpec((1, 1, C_pad), lambda i: (i, 0, 0)),
                pl.BlockSpec((1, 1, C_pad), lambda i: (i, 0, 0)),
            ),
        ),
        compiler_params=cparams,
    )(patches_p, w_p)

    # Fold BN into per-channel scale/shift (tiny XLA op on (n_tiles, C_pad)).
    count = jnp.float32(R)
    mean = jnp.sum(sums_t, axis=(0, 1)) / count                         # (Cp,)
    var = jnp.maximum(jnp.sum(sumsqs_t, axis=(0, 1)) / count - mean * mean, 0.0)
    gamma_p = jnp.pad(gamma.astype(jnp.float32), (0, C_pad - Cout))
    beta_p = jnp.pad(beta.astype(jnp.float32), (0, C_pad - Cout))
    scale = gamma_p * jax.lax.rsqrt(var + eps)
    shift = beta_p - mean * scale
    params = jnp.stack([scale, shift], axis=0)                          # (2, Cp)

    # ---------------- Pass 2: recompute conv, fused BN + LeakyReLU -------------
    kernel2 = functools.partial(_conv_bn_lrelu_kernel, cout=Cout,
                                negative_slope=negative_slope)
    out_flat = pl.pallas_call(
        kernel2,
        out_shape=jax.ShapeDtypeStruct((R_pad, Cout), jnp.float32),
        grid_spec=pltpu.PrefetchScalarGridSpec(
            num_scalar_prefetch=0,
            grid=(n_tiles,),
            in_specs=[
                pl.BlockSpec((TM, K_pad), lambda i: (i, 0)),
                pl.BlockSpec((K_pad, C_pad), lambda i: (0, 0)),
                pl.BlockSpec((2, C_pad), lambda i: (0, 0)),
            ],
            out_specs=pl.BlockSpec((TM, Cout), lambda i: (i, 0)),
        ),
        compiler_params=cparams,
    )(patches_p, w_p, params)

    # TODO(synk): return NHWC (the lane-dense layout the kernel already
    # produces) when the consumer allows it; the NCHW transpose is XLA glue.
    out = out_flat[:R, :].reshape(N, OH, OW, Cout).transpose(0, 3, 1, 2)
    return out


# --------------------------------------------------------------------------
# Pure-JAX f32 reference (same semantics as the PyTorch module in train mode).
# --------------------------------------------------------------------------
def _reference(x, weight, bias, gamma, beta, *, ksize, padding, stride, dilation,
               eps=1e-5, negative_slope=0.1):
    N, Cin, H, W = x.shape
    Cout = weight.shape[0]
    patches, OH, OW = _im2col(x, ksize, stride, padding, dilation)
    conv = patches @ weight.reshape(Cout, -1).T + bias[None, :]
    mean = conv.mean(axis=0)
    var = ((conv - mean) ** 2).mean(axis=0)
    y = gamma * (conv - mean) * jax.lax.rsqrt(var + eps) + beta
    y = jnp.where(y > 0, y, negative_slope * y)
    return y.reshape(N, OH, OW, Cout).transpose(0, 3, 1, 2)


if __name__ == "__main__":
    # Module config: Conv_BN_LeakyReLU(in_channels=4, out_channels=8, ksize=3,
    #                                  padding=1, stride=1, dilation=1)
    N, Cin, H, W = 2, 4, 16, 16
    Cout, ksize, padding, stride, dilation = 8, 3, 1, 1, 1

    key = jax.random.PRNGKey(0)
    kx, kw, kb, kg, kbt = jax.random.split(key, 5)

    x = jax.random.normal(kx, (N, Cin, H, W), dtype=jnp.float32)

    fan_in = Cin * ksize * ksize
    weight = jax.random.normal(kw, (Cout, Cin, ksize, ksize), jnp.float32) / jnp.sqrt(fan_in)
    bias = jax.random.normal(kb, (Cout,), jnp.float32) * 0.1
    gamma = 1.0 + 0.1 * jax.random.normal(kg, (Cout,), jnp.float32)
    beta = 0.1 * jax.random.normal(kbt, (Cout,), jnp.float32)

    # tile_m=128 so the R=512 demo exercises the multi-tile partial-stats path
    # (4 grid steps per pass).
    out = conv_bn_leakyrelu(x, weight, bias, gamma, beta,
                            ksize=ksize, padding=padding,
                            stride=stride, dilation=dilation,
                            tile_m=128)
    jax.block_until_ready(out)
    assert out.shape == (N, Cout, H, W)
    assert bool(jnp.all(jnp.isfinite(out)))

    ref = _reference(x, weight, bias, gamma, beta,
                     ksize=ksize, padding=padding,
                     stride=stride, dilation=dilation)
    max_err = float(jnp.max(jnp.abs(out - ref)))
    # bf16 operands vs f32 reference -> small absolute error on unit-scale
    # (post-BN) outputs; 0.25 comfortably separates this from real bugs.
    assert max_err < 0.25, f"max abs error {max_err}"

    print("KERNEL_OK")
</pallas_src>

<mosaic_0001>
module attributes {stable_mosaic.version = 11 : i64} {
  func.func @_conv_stats_kernel(%arg0: i32, %arg1: memref<128x128xbf16, #tpu.memory_space<vmem>>, %arg2: memref<128x128xbf16, #tpu.memory_space<vmem>>, %arg3: memref<1x1x128xf32, #tpu.memory_space<vmem>>, %arg4: memref<1x1x128xf32, #tpu.memory_space<vmem>>) attributes {dimension_semantics = [#tpu.dimension_semantics<parallel>], iteration_bounds = array<i64: 4>, scalar_prefetch = 0 : i64, scratch_operands = 0 : i64, tpu.core_type = #tpu.core_type<tc>, window_params = [{transform_indices = @transform_0, window_bounds = array<i64: 128, 128>}, {pipeline_mode = #tpu.pipeline_mode<synchronous>, transform_indices = @transform_1, window_bounds = array<i64: 128, 128>}, {transform_indices = @transform_2, window_bounds = array<i64: 1, 1, 128>}, {transform_indices = @transform_3, window_bounds = array<i64: 1, 1, 128>}]} {
    %c0 = arith.constant 0 : index
    %c0_0 = arith.constant 0 : index
    %0 = vector.load %arg1[%c0, %c0_0] : memref<128x128xbf16, #tpu.memory_space<vmem>>, vector<128x128xbf16>
    %c0_1 = arith.constant 0 : index
    %c0_2 = arith.constant 0 : index
    %1 = vector.load %arg2[%c0_1, %c0_2] : memref<128x128xbf16, #tpu.memory_space<vmem>>, vector<128x128xbf16>
    %cst = arith.constant dense<0.000000e+00> : vector<128x128xf32>
    %2 = tpu.matmul %0, %1, %cst {dimension_numbers = #tpu.dot_dimension_numbers<[1], [0], [0], [1], [0, 0, 1, 1], [], []>} : vector<128x128xbf16>, vector<128x128xbf16>, vector<128x128xf32> -> vector<128x128xf32>
    %cst_3 = arith.constant dense<0.000000e+00> : vector<128xf32>
    %3 = vector.multi_reduction <add>, %2, %cst_3 [0] : vector<128x128xf32> to vector<128xf32>
    %4 = vector.shape_cast %3 : vector<128xf32> to vector<1x128xf32>
    %5 = arith.mulf %2, %2 : vector<128x128xf32>
    %cst_4 = arith.constant dense<0.000000e+00> : vector<128xf32>
    %6 = vector.multi_reduction <add>, %5, %cst_4 [0] : vector<128x128xf32> to vector<128xf32>
    %7 = vector.shape_cast %6 : vector<128xf32> to vector<1x128xf32>
    %8 = vector.shape_cast %4 : vector<1x128xf32> to vector<1x1x128xf32>
    %c0_5 = arith.constant 0 : index
    %c0_6 = arith.constant 0 : index
    %c0_7 = arith.constant 0 : index
    %9 = vector.load %arg3[%c0_5, %c0_6, %c0_7] : memref<1x1x128xf32, #tpu.memory_space<vmem>>, vector<1x1x128xf32>
    tpu.vector_store %arg3[%c0_5, %c0_6, %c0_7], %8 {strides = array<i32>} : memref<1x1x128xf32, #tpu.memory_space<vmem>>, vector<1x1x128xf32>,
    %10 = vector.shape_cast %7 : vector<1x128xf32> to vector<1x1x128xf32>
    %c0_8 = arith.constant 0 : index
    %c0_9 = arith.constant 0 : index
    %c0_10 = arith.constant 0 : index
    %11 = vector.load %arg4[%c0_8, %c0_9, %c0_10] : memref<1x1x128xf32, #tpu.memory_space<vmem>>, vector<1x1x128xf32>
    tpu.vector_store %arg4[%c0_8, %c0_9, %c0_10], %10 {strides = array<i32>} : memref<1x1x128xf32, #tpu.memory_space<vmem>>, vector<1x1x128xf32>,
    return
  }
  func.func @transform_0(%arg0: i32) -> (i32, i32) {
    %c0_i32 = arith.constant 0 : i32
    %c0_i32_0 = arith.constant 0 : i32
    return %arg0, %c0_i32 : i32, i32
  }
  func.func @transform_1(%arg0: i32) -> (i32, i32) {
    %c0_i32 = arith.constant 0 : i32
    %c0_i32_0 = arith.constant 0 : i32
    %c0_i32_1 = arith.constant 0 : i32
    return %c0_i32, %c0_i32_0 : i32, i32
  }
  func.func @transform_2(%arg0: i32) -> (i32, i32, i32) {
    %c0_i32 = arith.constant 0 : i32
    %c0_i32_0 = arith.constant 0 : i32
    %c0_i32_1 = arith.constant 0 : i32
    return %arg0, %c0_i32, %c0_i32_0 : i32, i32, i32
  }
  func.func @transform_3(%arg0: i32) -> (i32, i32, i32) {
    %c0_i32 = arith.constant 0 : i32
    %c0_i32_0 = arith.constant 0 : i32
    %c0_i32_1 = arith.constant 0 : i32
    return %arg0, %c0_i32, %c0_i32_0 : i32, i32, i32
  }
}

</mosaic_0001>

<bundles_post_ra>
// kernel: tpu_custom_call.1
= control target key start
LH: loop header
LB: loop body
LE: loop exit
PB: predicated region body
PF: predicated region fallthrough
CT: control target
= control target key end

     0   :  { %9 = vsyncpa [#allocation3], 0  ;;  %s1144_s0 = inlined_call_operand.hbm [shape: bf16[512,128], index: 0, kind: input, shape index: {}]   ;;  %s1145_s1 = inlined_call_operand.hbm [shape: bf16[128,128], index: 1, kind: input, shape index: {}]   ;;  %s1146_s2 = inlined_call_operand.hbm [shape: f32[4,1,128], index: 2, kind: output, shape index: {0}]   ;;  %s1147_s3 = inlined_call_operand.hbm [shape: f32[4,1,128], index: 3, kind: output, shape index: {1}]  }
   0x1   :  { %11 = vsyncpa [#allocation3 + $0x1], 0 }
   0x2   :  { %12 = vsyncpa [#allocation6], 0 }
   0x3   :  { %13 = vsyncpa [#allocation4], 0 }
   0x4   :  { %15 = vsyncpa [#allocation4 + $0x1], 0 }
   0x5   :  { %16 = vsyncpa [#allocation9], 0 }
   0x6   :  { %18 = vsyncpa [#allocation9 + $0x1], 0  ;;  %s957_s12 = smov 0   ;;  %s959_s13 = smov 0  }
   0x7   :  { %s961_s14 = smov 0   ;;  %s963_s15 = smov 0  }
   0x8 LB: > { %s978_s16 = sadd.s32 4294967295, %s932_s15   ;;  %s589_s17 = sadd.s32 4294967294, %s932_s15   ;;  %s932_s15 = sphi %s963_s15, %s1156_s15   ;;  %s928_s14 = sphi %s961_s14, %s1155_s14   ;;  %s924_s13 = sphi %s959_s13, %s1154_s13   ;;  %s920_s12 = sphi %s957_s12, %s1153_s12  }
   0x9   : > { %p44_p0 = scmp.ne.s32.totalorder %s924_s13, %s920_s12  ;;  %p45_p1 = scmp.eq.s32.totalorder %s978_s16, 0 }
   0xa   : > { %p89_p2 = scmp.eq.s32.totalorder %s978_s16, 3  ;;  %p95_p3 = scmp.eq.s32.totalorder %s589_s17, 3 }
   0xb   : > { %p987_p4 = por %p45_p1, %p44_p0  ;;  %p590_p5 = scmp.ge.s32.totalorder %s932_s15, 1 }
   0xc   : > { %p992_p6 = por %p95_p3, %p44_p0  ;;  %p128_p7 = scmp.lt.s32.totalorder %s932_s15, 5 }
   0xd   : > { %s139_s22 = sshll.u32 %s1145_s1, 4  ;;  %s934_s24 = smov [#allocation5]   ;;  %s140_s22 = int_to_ptr.hbm [resolvable:$true] %s139_s22 }
   0xe   : > { %p1000_p8 = pnand %p590_p5, %p128_p7  ;;  %s141_s25 = sshll.u32 %s934_s24, 4  ;;  %s142_s25 = int_to_ptr.vmem [resolvable:$true] %s141_s25 }
   0xf   : > { %s1009_s26 = sadd.s32 1, %s932_s15   ;;  %s935_s27 = smov 64  }
  0x10   : > { %p716_p9 = pneg %p1000_p8  ;;  %s936_s28 = smov 4  }
  0x11   : > { %s28_s29 = ssub.s32 %s932_s15, %s1009_s26  ;;  %s31_s30 = sadd.s32 1, %s928_s14 }
  0x12   : > { %p717_p10 = pnand %p716_p9, %p45_p1  ;;  %p29_p11 = scmp.eq.s32.totalorder %s28_s29, 0 }
  0x13   : > { %p38_p12 = scmp.ne.s32.totalorder %s928_s14, %s924_s13  ;;  %p39_p13 = scmp.eq.s32.totalorder %s932_s15, 0 }
  0x14   : > { %719 = dma.hbm_to_vmem [thread:$0]  (!%p717_p10), %s140_s22, 1024, %s142_s25, [#allocation6], %s935_s27, %s935_s27, %s936_s28  }
  0x15   : > { %s1021_s4 = scalar_select %p29_p11, %s928_s14, %s31_s30  }
  0x16   : > { %p1025_p0 = por %p89_p2, %p38_p12  ;;  %p732_p3 = scmp.lt.s32.totalorder %s932_s15, 4 }
  0x17   : > { %s155_s6 = sand.u32 1, %s928_s14   ;;  %s665_s7 = sshll.u32 %s932_s15, 6 }
  0x18   : > { %p40_p5 = por %p39_p13, %p38_p12  ;;  %s593_s8 = sshll.u32 %s155_s6, 6 }
  0x19   : > { %s164_s11 = scalar_lea.hbm %s1144_s0, %s665_s7  ;;  %s159_s20 = scalar_lea.vmem [#allocation2], %s593_s8 }
  0x1a   : > { %s165_s17 = sshll.u32 %s164_s11, 4  ;;  %s167_s21 = sshll.u32 %s159_s20, 4  ;;  %s166_s17 = int_to_ptr.hbm [resolvable:$true] %s165_s17  ;;  %s168_s21 = int_to_ptr.vmem [resolvable:$true] %s167_s21 }
  0x1b   : > { %p1035_p7 = pnand %p732_p3, %p40_p5  ;;  %s156_s24 = scalar_lea.sflag [#allocation3], %s155_s6 }
  0x1c   : > { %s800_s25 = sshra.s32 %s166_s17, 4  ;;  %s807_s8 = scalar_lea.hbm %s1144_s0, 256  ;;  %s801_s25 = int_to_ptr.hbm [resolvable:$true] %s800_s25 }
  0x1d   : > { %s802_s29 = scalar_lea.hbm %s801_s25, 64  ;;  %p804_p9 = pneg %p1035_p7 }
  0x1e   : > { %p803_p2 = scmp.ne.s32.totalorder %s801_s25, %s802_s29  ;;  %p808_p12 = scmp.lt.s32.totalorder %s801_s25, %s1144_s0 }
  0x1f   : > { %p809_p13 = scmp.lt.s32.totalorder %s807_s8, %s802_s29 }
  0x20   : > { %p805_p10 = pnand %p804_p9, %p803_p2 }
  0x21   : > { %p810_p3 = por %p809_p13, %p808_p12 }
  0x22   : > { %p806_p11 = pneg %p805_p10 }
  0x24   : > { %p811_p5 = pnand %p810_p3, %p806_p11 }
  0x26   : > { %814 = shalt.err (!%p811_p5)
}
  0x27   : > { %723 = dma.hbm_to_vmem [thread:$0]  (!%p1035_p7), %s166_s17, 1024, %s168_s21, %s156_s24, %s935_s27, %s935_s27, %s936_s28  }
  0x28   : > { %179 = sbr.rel (%p1000_p8) target bundleno = 283 (0x11b), region = 28  ;;  %s1055_s6 = sand.u32 (!%p1000_p8), 1, %s924_s13  }
  0x29   : > { %s597_s11 = sshll.u32 (!%p1000_p8), %s1055_s6, 6  ;;  %s182_s20 = scalar_lea.sflag (!%p1000_p8), [#allocation3], %s1055_s6 }
  0x2a   : > { %s1059_s25 = scalar_lea.vmem (!%p1000_p8), [#allocation2], %s597_s11 }
  0x2d   : > { %903 = dma.done.wait (%p987_p4), %s182_s20, 1024  }
  0x2e   : > { %905 = vsyncadd (%p987_p4), %s182_s20, 4294966272 }
  0x2f   : > { %907 = dma.done.wait (%p45_p1), [#allocation6], 1024  }
  0x30   : > { %909 = vsyncadd (%p45_p1), [#allocation6], 4294966272  ;;  %v681_v0 = vld [vmem:[#allocation5 + $0x38] sm:$0xff]  ;;  %v680_v1 = vld [vmem:[#allocation5 + $0x30] sm:$0xff]  ;;  %s468_s27 = scalar_lea.hbm %s1146_s2, %s978_s16  ;;  %s481_s21 = scalar_lea.hbm %s1147_s3, %s978_s16 }
  0x31   : > { %346 = vmatpush.bf16.msra.mxu0 %v681_v0  ;;  %682 = vmatpush.bf16.msra.mxu1 %v681_v0  ;;  %v679_v2 = vld [vmem:[#allocation5 + $0x28] sm:$0xff]  ;;  %v678_v3 = vld [vmem:[#allocation5 + $0x20] sm:$0xff]  ;;  %v677_v4 = vld [vmem:[#allocation5 + $0x18] sm:$0xff]  ;;  %s210_s22 = scalar_lea.vmem [#allocation7], %s1055_s6  ;;  %s1088_s29 = sshll.u32 %s468_s27, 4  ;;  %s473_s29 = int_to_ptr.hbm [resolvable:$true] %s1088_s29 }
  0x32   : > { %683 = vmatpush.bf16.msra.mxu2 %v681_v0  ;;  %684 = vmatpush.bf16.msra.mxu3 %v681_v0  ;;  %v676_v5 = vld [vmem:[#allocation5 + $0x10] sm:$0xff]  ;;  %v675_v6 = vld [vmem:[#allocation5 + $0x8] sm:$0xff]  ;;  %v674_v7 = vld [vmem:[#allocation5] sm:$0xff]  ;;  %s1086_s24 = sshll.u32 %s210_s22, 4  ;;  %s216_s30 = scalar_lea.vmem [#allocation8], %s1055_s6  ;;  %s471_s24 = int_to_ptr.vmem [resolvable:$true] %s1086_s24 }
  0x33   : > { %v666_v8 = vld [vmem:[%s1059_s25] sm:$0xff]  ;;  %v668_v9 = vld [vmem:[%s1059_s25 + $0x10] sm:$0xff]  ;;  %v667_v12 = vld [vmem:[%s1059_s25 + $0x8] sm:$0xff]  ;;  %s1091_s7 = sshll.u32 %s216_s30, 4  ;;  %s1093_s8 = sshll.u32 %s481_s21, 4  ;;  %s484_s7 = int_to_ptr.vmem [resolvable:$true] %s1091_s7  ;;  %s486_s8 = int_to_ptr.hbm [resolvable:$true] %s1093_s8 }
  0x34   : > { %v670_v10 = vld [vmem:[%s1059_s25 + $0x20] sm:$0xff]  ;;  %v672_v11 = vld [vmem:[%s1059_s25 + $0x30] sm:$0xff]  ;;  %v669_v13 = vld [vmem:[%s1059_s25 + $0x18] sm:$0xff]  ;;  %s456_s16 = scalar_lea.sflag [#allocation4], %s1055_s6  ;;  %s844_s9 = sshra.s32 %s473_s29, 4  ;;  %s845_s9 = int_to_ptr.hbm [resolvable:$true] %s844_s9 }
  0x35   : > { %347 = vmatpush.bf16.msra.mxu0 %v680_v1  ;;  %685 = vmatpush.bf16.msra.mxu1 %v680_v1  ;;  %v671_v14 = vld [vmem:[%s1059_s25 + $0x28] sm:$0xff]  ;;  %v673_v15 = vld [vmem:[%s1059_s25 + $0x38] sm:$0xff]  ;;  %s846_s10 = scalar_lea.hbm %s845_s9, 1  ;;  %s850_s25 = scalar_lea.hbm %s1146_s2, 4 }
  0x36   : > { %686 = vmatpush.bf16.msra.mxu2 %v680_v1  ;;  %687 = vmatpush.bf16.msra.mxu3 %v680_v1  ;;  %p847_p1 = scmp.ne.s32.totalorder %s845_s9, %s846_s10  ;;  %p851_p7 = scmp.lt.s32.totalorder %s845_s9, %s1146_s2 }
  0x37   : > { %p852_p2 = scmp.lt.s32.totalorder %s850_s25, %s846_s10 }
  0x38   : > { %p848_p4 = pnand %p847_p1, %p1025_p0 }
  0x39   : > { %348 = vmatpush.bf16.msra.mxu0 %v679_v2  ;;  %688 = vmatpush.bf16.msra.mxu1 %v679_v2  ;;  %p853_p9 = por %p852_p2, %p851_p7 }
  0x3a   : > { %689 = vmatpush.bf16.msra.mxu2 %v679_v2  ;;  %690 = vmatpush.bf16.msra.mxu3 %v679_v2  ;;  %p849_p8 = pneg %p848_p4 }
  0x3c   : > { %p854_p10 = pnand %p853_p9, %p849_p8 }
  0x3d   : > { %349 = vmatpush.bf16.msra.mxu0 %v678_v3  ;;  %691 = vmatpush.bf16.msra.mxu1 %v678_v3 }
  0x3e   : > { %692 = vmatpush.bf16.msra.mxu2 %v678_v3  ;;  %693 = vmatpush.bf16.msra.mxu3 %v678_v3 }
  0x41   : > { %350 = vmatpush.bf16.msra.mxu0 %v677_v4  ;;  %694 = vmatpush.bf16.msra.mxu1 %v677_v4 }
  0x42   : > { %695 = vmatpush.bf16.msra.mxu2 %v677_v4  ;;  %696 = vmatpush.bf16.msra.mxu3 %v677_v4 }
  0x45   : > { %351 = vmatpush.bf16.msra.mxu0 %v676_v5  ;;  %697 = vmatpush.bf16.msra.mxu1 %v676_v5 }
  0x46   : > { %698 = vmatpush.bf16.msra.mxu2 %v676_v5  ;;  %699 = vmatpush.bf16.msra.mxu3 %v676_v5 }
  0x49   : > { %352 = vmatpush.bf16.msra.mxu0 %v675_v6  ;;  %700 = vmatpush.bf16.msra.mxu1 %v675_v6 }
  0x4a   : > { %701 = vmatpush.bf16.msra.mxu2 %v675_v6  ;;  %702 = vmatpush.bf16.msra.mxu3 %v675_v6 }
  0x4d   : > { %353 = vmatpush.bf16.msra.mxu0 %v674_v7  ;;  %703 = vmatpush.bf16.msra.mxu1 %v674_v7 }
  0x4e   : > { %704 = vmatpush.bf16.msra.mxu2 %v674_v7  ;;  %705 = vmatpush.bf16.msra.mxu3 %v674_v7 }
  0x50   : > { %354 = vmatmul.bf16.vlgmr.msra.gmra.mxu0 %v666_v8  ;;  %364 = vmatmul.bf16.vlgmr.msra.gmra.mxu1 %v668_v9 }
  0x51   : > { %374 = vmatmul.bf16.vlgmr.msra.gmra.mxu2 %v670_v10  ;;  %384 = vmatmul.bf16.vlgmr.msra.gmra.mxu3 %v672_v11 }
  0x60   : > { %359 = vmatmul.bf16.gmra.mxu0 %v667_v12  ;;  %369 = vmatmul.bf16.gmra.mxu1 %v669_v13 }
  0x61   : > { %379 = vmatmul.bf16.gmra.mxu2 %v671_v14  ;;  %389 = vmatmul.bf16.gmra.mxu3 %v673_v15 }
  0xcd   : > { %v355_v16 = vpop.f32.mrf.mxu0  ;;  %v365_v17 = vpop.f32.mrf.mxu1 }
  0xce   : > { %v416_v26 = vmul.f32 %v355_v16, %v355_v16  ;;  %v420_v36 = vmul.f32 %v365_v17, %v365_v17 }
  0xd4   : > { %v375_v19 = vpop.f32.mrf.mxu2  ;;  %v385_v22 = vpop.f32.mrf.mxu3 }
  0xd5   : > { %v357_v18 = vpop.f32.mrf.mxu0  ;;  %v367_v20 = vpop.f32.mrf.mxu1  ;;  %v424_v50 = vmul.f32 %v375_v19, %v375_v19  ;;  %v428_v0 = vmul.f32 %v385_v22, %v385_v22 }
  0xd6   : > { %v417_v24 = vmul.f32 %v357_v18, %v357_v18  ;;  %v395_v27 = vadd.f32 %v357_v18, %v355_v16  ;;  %v421_v40 = vmul.f32 %v367_v20, %v367_v20 }
  0xd8   : > { %v432_v29 = vadd.f32 %v417_v24, %v416_v26 }
  0xdc   : > { %v377_v23 = vpop.f32.mrf.mxu2  ;;  %v387_v35 = vpop.f32.mrf.mxu3 }
  0xdd   : > { %v360_v21 = vpop.f32.mrf.mxu0  ;;  %v370_v25 = vpop.f32.mrf.mxu1  ;;  %v425_v54 = vmul.f32 %v377_v23, %v377_v23  ;;  %v429_v3 = vmul.f32 %v387_v35, %v387_v35 }
  0xde   : > { %v418_v28 = vmul.f32 %v360_v21, %v360_v21  ;;  %v396_v30 = vadd.f32 %v395_v27, %v360_v21  ;;  %v422_v44 = vmul.f32 %v370_v25, %v370_v25 }
  0xe0   : > { %v433_v32 = vadd.f32 %v432_v29, %v418_v28 }
  0xe4   : > { %v380_v39 = vpop.f32.mrf.mxu2  ;;  %v390_v53 = vpop.f32.mrf.mxu3 }
  0xe5   : > { %v362_v31 = vpop.f32.mrf.mxu0  ;;  %v372_v43 = vpop.f32.mrf.mxu1  ;;  %v426_v59 = vmul.f32 %v380_v39, %v380_v39  ;;  %v430_v8 = vmul.f32 %v390_v53, %v390_v53 }
  0xe6   : > { %v397_v33 = vadd.f32 %v396_v30, %v362_v31  ;;  %v419_v34 = vmul.f32 %v362_v31, %v362_v31  ;;  %v423_v48 = vmul.f32 %v372_v43, %v372_v43 }
  0xe8   : > { %v398_v37 = vadd.f32 %v397_v33, %v365_v17  ;;  %v434_v38 = vadd.f32 %v433_v32, %v419_v34 }
  0xea   : > { %v435_v41 = vadd.f32 %v434_v38, %v420_v36  ;;  %v399_v42 = vadd.f32 %v398_v37, %v367_v20 }
  0xec   : > { %v400_v45 = vadd.f32 %v399_v42, %v370_v25  ;;  %v436_v46 = vadd.f32 %v435_v41, %v421_v40  ;;  %v382_v57 = vpop.f32.mrf.mxu2  ;;  %v392_v6 = vpop.f32.mrf.mxu3 }
  0xed   : > { %v427_v63 = vmul.f32 %v382_v57, %v382_v57  ;;  %v431_v12 = vmul.f32 %v392_v6, %v392_v6 }
  0xee   : > { %v401_v47 = vadd.f32 %v400_v45, %v372_v43  ;;  %v437_v49 = vadd.f32 %v436_v46, %v422_v44 }
  0xf0   : > { %v402_v51 = vadd.f32 %v401_v47, %v375_v19  ;;  %v438_v52 = vadd.f32 %v437_v49, %v423_v48 }
  0xf2   : > { %v439_v55 = vadd.f32 %v438_v52, %v424_v50  ;;  %v403_v56 = vadd.f32 %v402_v51, %v377_v23 }
  0xf4   : > { %v404_v58 = vadd.f32 %v403_v56, %v380_v39  ;;  %v440_v60 = vadd.f32 %v439_v55, %v425_v54 }
  0xf6   : > { %v441_v61 = vadd.f32 %v440_v60, %v426_v59  ;;  %v405_v62 = vadd.f32 %v404_v58, %v382_v57 }
  0xf8   : > { %v406_v1 = vadd.f32 %v405_v62, %v385_v22  ;;  %v442_v2 = vadd.f32 %v441_v61, %v427_v63 }
  0xfa   : > { %v443_v4 = vadd.f32 %v442_v2, %v428_v0  ;;  %v407_v5 = vadd.f32 %v406_v1, %v387_v35 }
  0xfc   : > { %v408_v7 = vadd.f32 %v407_v5, %v390_v53  ;;  %v444_v9 = vadd.f32 %v443_v4, %v429_v3 }
  0xfe   : > { %v445_v10 = vadd.f32 %v444_v9, %v430_v8  ;;  %v409_v11 = vadd.f32 %v408_v7, %v392_v6 }
 0x100   : > { %v410_v13 = vrot.slane %v409_v11, 4  ;;  %v446_v14 = vadd.f32 %v445_v10, %v431_v12 }
 0x102   : > { %v411_v15 = vadd.f32 %v410_v13, %v409_v11  ;;  %v447_v16 = vrot.slane %v446_v14, 4 }
 0x104   : > { %v412_v17 = vrot.slane %v411_v15, 2  ;;  %v448_v18 = vadd.f32 %v447_v16, %v446_v14 }
 0x106   : > { %v413_v19 = vadd.f32 %v412_v17, %v411_v15  ;;  %v449_v20 = vrot.slane %v448_v18, 2 }
 0x108   : > { %v414_v21 = vrot.slane %v413_v19, 1  ;;  %v450_v22 = vadd.f32 %v449_v20, %v448_v18 }
 0x10a   : > { %v415_v23 = vadd.f32 %v414_v21, %v413_v19  ;;  %v451_v24 = vrot.slane %v450_v22, 1 }
 0x10c   : > { %v452_v25 = vadd.f32 %v451_v24, %v450_v22  ;;  %453 = vst [vmem:[%s210_s22] sm:$0x1] %v415_v23 }
 0x10d   : > { %857 = shalt.err (!%p854_p10)
}
 0x10e   : > { %712 = dma.vmem_to_hbm [thread:$0]  (%p1025_p0), %s471_s24, 16, %s473_s29, %s456_s16   ;;  %454 = vst [vmem:[%s216_s30] sm:$0x1] %v452_v25 }
 0x10f   : > { %s460_s27 = scalar_lea.sflag [#allocation9], %s1055_s6  ;;  %s872_s28 = sshra.s32 %s486_s8, 4  ;;  %s873_s28 = int_to_ptr.hbm [resolvable:$true] %s872_s28 }
 0x110   : > { %s874_s17 = scalar_lea.hbm %s873_s28, 1  ;;  %s878_s9 = scalar_lea.hbm %s1147_s3, 4 }
 0x111   : > { %p875_p11 = scmp.ne.s32.totalorder %s873_s28, %s874_s17  ;;  %p879_p3 = scmp.lt.s32.totalorder %s873_s28, %s1147_s3 }
 0x112   : > { %p880_p5 = scmp.lt.s32.totalorder %s878_s9, %s874_s17 }
 0x113   : > { %p876_p12 = pnand %p875_p11, %p1025_p0 }
 0x114   : > { %p881_p1 = por %p880_p5, %p879_p3 }
 0x115   : > { %p877_p13 = pneg %p876_p12 }
 0x117   : > { %p882_p4 = pnand %p881_p1, %p877_p13 }
 0x119   : > { %885 = shalt.err (!%p882_p4)
}
 0x11a   : > { %713 = dma.vmem_to_hbm [thread:$0]  (%p1025_p0), %s484_s7, 16, %s486_s8, %s460_s27  }
 0x11b PF: > { %p734_p8 = scmp.ge.s32.totalorder %s932_s15, 2  ;;  %s497_s6 = sand.u32 1, %s920_s12  }
 0x11c   : > { %s498_s24 = scalar_lea.sflag [#allocation4], %s497_s6 }
 0x11d   : > { %p725_p7 = pnand %p734_p8, %p992_p6 }
 0x11f   : > { %p726_p2 = pneg %p725_p7 }
 0x121   : > { %911 = dma.done.wait (%p726_p2), %s498_s24, 16  }
 0x122   : > { %913 = vsyncadd (%p726_p2), %s498_s24, 4294967280  ;;  %s507_s29 = scalar_lea.sflag [#allocation9], %s497_s6 }
 0x123   : > { %915 = dma.done.wait (%p726_p2), %s507_s29, 16  }
 0x124   : > { %917 = vsyncadd (%p726_p2), %s507_s29, 4294967280  ;;  %p21_p0 = scmp.ge.s32.totalorder %s1009_s26, 6   ;;  %s1153_s12 = smov %s924_s13 }
 0x125   : > { %s1154_s13 = smov %s928_s14  ;;  %s1155_s14 = smov %s1021_s4 }
 0x126   : > { %s1156_s15 = smov %s1009_s26  ;;  %23 = sbr.rel (!%p21_p0) target bundleno = 8 (0x8), region = 94 }
 0x12b   :  { %512 = vsyncpa [#allocation3], 1 }
 0x12c   :  { %514 = vsyncpa [#allocation3 + $0x1], 1 }
 0x12d   :  { %515 = vsyncpa [#allocation6], 1 }
 0x12e   :  { %516 = vsyncpa [#allocation4], 1 }
 0x12f   :  { %518 = vsyncpa [#allocation4 + $0x1], 1 }
 0x130   :  { %519 = vsyncpa [#allocation9], 1 }
 0x131   :  { %521 = vsyncpa [#allocation9 + $0x1], 1 }

</bundles_post_ra>
